<compile_context>
chip_gen: v5e
topology: v5e:2x2
jax: 0.10.0
libtpu: 0.0.40
codegen_flags: <defaults>
</compile_context>

<pallas_src>
import functools

import jax
import jax.numpy as jnp
from jax.experimental import pallas as pl
from jax.experimental.pallas import tpu as pltpu

EPS = 1e-5
_VPU_CONV_MAX_C = 8               # tiny contractions stay on the VPU; else MXU
_TILE_BYTES = 4 * 1024 * 1024     # per-tile activation budget (sublane-padded)
_MAX_TS = 8192                    # lane-width cap (keeps the in-kernel fold short)
_VMEM_LIMIT = 32 * 1024 * 1024    # safe on v5e/v6e (128 MiB) and v7x (64 MiB)


def _round_up(x, m):
    return (x + m - 1) // m * m


def _sublane_pad(c, itemsize):
    # Physical sublane padding: 8 rows/vreg for 4-byte, 16 for 2-byte dtypes.
    pack = max(1, 4 // itemsize)
    return _round_up(c, 8 * pack)


def _conv1x1(w, x, c):
    """y[co, p] = sum_ci w[co, ci] * x[ci, p]; f32 result.  w:(C,C), x:(C,TS)."""
    if c <= _VPU_CONV_MAX_C:
        # Tiny contraction: C broadcast multiply-adds on the VPU (f32 in-vreg),
        # avoiding a <4%-utilized systolic array.
        wf = w.astype(jnp.float32)
        xf = x.astype(jnp.float32)
        acc = wf[:, 0:1] * xf[0:1, :]
        for ci in range(1, c):
            acc = acc + wf[:, ci:ci + 1] * xf[ci:ci + 1, :]
        return acc
    return jnp.dot(w, x, preferred_element_type=jnp.float32)


def _lane_fold(y, ts):
    """(C, TS) -> (C, 128) lane-partial sums with plain VPU adds (no XLU reduce)."""
    acc = y[:, 0:128]
    for j in range(1, ts // 128):
        acc = acc + y[:, j * 128:(j + 1) * 128]
    return acc


def _stats_kernel(x_ref, w_ref, sum_ref, ssq_ref, *, c, ts):
    # Per-batch partial accumulators: the output block index follows the batch
    # axis, so marking it "parallel" (v7x megacore) cannot race.
    @pl.when(pl.program_id(1) == 0)
    def _init():
        sum_ref[...] = jnp.zeros_like(sum_ref)
        ssq_ref[...] = jnp.zeros_like(ssq_ref)

    y = _conv1x1(w_ref[...], x_ref[...], c)                 # (C, TS) f32
    sum_ref[...] += _lane_fold(y, ts)
    ssq_ref[...] += _lane_fold(y * y, ts)


def _apply_kernel(x_ref, w_ref, scale_ref, shift_ref, o_ref, *, c):
    # Folded BN affine + ReLU: 2 VPU ops per element after the conv recompute.
    y = _conv1x1(w_ref[...], x_ref[...], c)                 # (C, TS) f32
    o_ref[...] = jnp.maximum(
        y * scale_ref[...] + shift_ref[...], jnp.float32(0.0)
    ).astype(o_ref.dtype)


def _choose_tiling(hw, c, itemsize):
    """Pick a lane-dense spatial tile TS (multiple of 128) and padded HW extent."""
    c_pad = _sublane_pad(c, itemsize)
    max_ts = (_TILE_BYTES // (c_pad * itemsize)) // 128 * 128
    max_ts = max(128, min(max_ts, _MAX_TS))
    if hw % 128 == 0:
        # Largest multiple-of-128 divisor of hw that fits the budget -> no pad.
        ts, cand = 128, 128
        while cand <= min(hw, max_ts):
            if hw % cand == 0:
                ts = cand
            cand += 128
        return ts, hw
    # Otherwise pad HW up to a multiple of TS so every tile is full and the
    # pass-2 output stays lane-dense (unmasked vst).
    ts = min(_round_up(hw, 128), max_ts)
    return ts, _round_up(hw, ts)


def bottleneck_forward(x_nchw, conv_w, bn_gamma, bn_beta, eps=EPS):
    """Fused 1x1 conv -> BatchNorm2d (training-mode batch stats) -> ReLU.

    x_nchw: (N, C, H, W); conv_w: (C, C, 1, 1); bn_gamma / bn_beta: (C,).
    Streams activations/weight in the caller's dtype (f32 or bf16) and
    accumulates in f32.
    """
    n, c, h, w = x_nchw.shape
    hw = h * w
    itemsize = jnp.dtype(x_nchw.dtype).itemsize
    ts, hw_p = _choose_tiling(hw, c, itemsize)
    s_tiles = hw_p // ts

    # NCHW-native flatten (no transpose); zero-pad HW only when it is not a
    # multiple of the tile (padded zeros contribute nothing to the stats and
    # are sliced off at the end).
    x3 = x_nchw.reshape(n, c, hw)
    if hw_p != hw:
        x3 = jnp.pad(x3, ((0, 0), (0, 0), (0, hw_p - hw)))
    w2 = conv_w.reshape(c, c).astype(x3.dtype)               # stream weight at x dtype

    x_spec = pl.BlockSpec((None, c, ts), lambda b, s: (b, 0, s))
    w_spec = pl.BlockSpec((c, c), lambda b, s: (0, 0))
    acc_spec = pl.BlockSpec((None, c, 128), lambda b, s: (b, 0, 0))
    vec_spec = pl.BlockSpec((c, 1), lambda b, s: (0, 0))

    flops_conv = 2 * n * hw_p * c * c
    bytes_x = n * c * hw_p * itemsize

    # ---------------- Pass 1: batch statistics ----------------
    psum, pssq = pl.pallas_call(
        functools.partial(_stats_kernel, c=c, ts=ts),
        out_shape=(jax.ShapeDtypeStruct((n, c, 128), jnp.float32),
                   jax.ShapeDtypeStruct((n, c, 128), jnp.float32)),
        grid=(n, s_tiles),
        in_specs=[x_spec, w_spec],
        out_specs=(acc_spec, acc_spec),
        compiler_params=pltpu.CompilerParams(
            dimension_semantics=("parallel", "arbitrary"),
            vmem_limit_bytes=_VMEM_LIMIT),
        cost_estimate=pl.CostEstimate(
            flops=flops_conv + 3 * n * hw_p * c,
            transcendentals=0,
            bytes_accessed=bytes_x + c * c * itemsize + 2 * n * c * 128 * 4),
    )(x3, w2)

    # ---- Fold training-mode BN into per-channel scale / shift (global count) ----
    count = jnp.float32(n * hw)                   # real element count (pad is zero)
    sums = jnp.sum(psum, axis=(0, 2))
    ssqs = jnp.sum(pssq, axis=(0, 2))
    mean = sums / count
    var = jnp.maximum(ssqs / count - mean * mean, 0.0)        # biased, as PyTorch
    scale = bn_gamma.astype(jnp.float32) * jax.lax.rsqrt(var + eps)
    shift = bn_beta.astype(jnp.float32) - mean * scale
    # TODO(synk): running_mean / running_var buffer updates (PyTorch training
    # side effect, unbiased variance) are not produced by forward(); handle
    # outside the kernel if needed.

    # ---------------- Pass 2: conv recompute + affine + ReLU ----------------
    out3 = pl.pallas_call(
        functools.partial(_apply_kernel, c=c),
        out_shape=jax.ShapeDtypeStruct((n, c, hw_p), x_nchw.dtype),
        grid=(n, s_tiles),
        in_specs=[x_spec, w_spec, vec_spec, vec_spec],
        out_specs=x_spec,
        compiler_params=pltpu.CompilerParams(
            dimension_semantics=("parallel", "parallel"),
            vmem_limit_bytes=_VMEM_LIMIT),
        cost_estimate=pl.CostEstimate(
            flops=flops_conv + 3 * n * hw_p * c,
            transcendentals=0,
            bytes_accessed=2 * bytes_x + c * c * itemsize + 2 * c * 4),
    )(x3, w2, scale.reshape(c, 1), shift.reshape(c, 1))

    if hw_p != hw:
        out3 = out3[:, :, :hw]
    # TODO(synk): for ResNet-scale C (512-2048) add a C_out grid axis so the
    # (C, C) weight tile fits VMEM, and consider materializing y from pass 1
    # instead of recomputing W.x once the conv becomes compute-bound.
    return out3.reshape(n, c, h, w)


if __name__ == "__main__":
    key = jax.random.PRNGKey(0)
    kx, kw = jax.random.split(key)

    # Small shapes consistent with the module: batch=2, ch_in=4, spatial=16.
    N, C, H, W = 2, 4, 16, 16
    x = jax.random.normal(kx, (N, C, H, W), dtype=jnp.float32)

    # nn.Conv2d-like uniform init; BN defaults gamma=1, beta=0.
    bound = 1.0 / float(C) ** 0.5
    conv_w = jax.random.uniform(kw, (C, C, 1, 1), dtype=jnp.float32,
                                minval=-bound, maxval=bound)
    bn_gamma = jnp.ones((C,), dtype=jnp.float32)
    bn_beta = jnp.zeros((C,), dtype=jnp.float32)

    out = jax.jit(bottleneck_forward)(x, conv_w, bn_gamma, bn_beta)
    jax.block_until_ready(out)
    assert out.shape == (N, C, H, W)

    # Pure-JAX reference of the same fused forward (conv1x1 -> BN(train) -> ReLU).
    y_ref = jnp.einsum("oc,nchw->nohw", conv_w.reshape(C, C), x)
    mu = y_ref.mean(axis=(0, 2, 3), keepdims=True)
    var = y_ref.var(axis=(0, 2, 3), keepdims=True)            # biased variance
    ref = jnp.maximum(
        (y_ref - mu) * jax.lax.rsqrt(var + EPS) * bn_gamma.reshape(1, C, 1, 1)
        + bn_beta.reshape(1, C, 1, 1), 0.0)
    assert jnp.allclose(out, ref, atol=2e-3, rtol=2e-3)

    print("KERNEL_OK")
</pallas_src>

<mosaic_0001>
module attributes {stable_mosaic.version = 11 : i64} {
  func.func @_stats_kernel(%arg0: i32, %arg1: i32, %arg2: memref<1x4x256xf32, #tpu.memory_space<vmem>>, %arg3: memref<4x4xf32, #tpu.memory_space<vmem>>, %arg4: memref<1x4x128xf32, #tpu.memory_space<vmem>>, %arg5: memref<1x4x128xf32, #tpu.memory_space<vmem>>) attributes {dimension_semantics = [#tpu.dimension_semantics<parallel>, #tpu.dimension_semantics<arbitrary>], iteration_bounds = array<i64: 2, 1>, scalar_prefetch = 0 : i64, scratch_operands = 0 : i64, tpu.core_type = #tpu.core_type<tc>, window_params = [{transform_indices = @transform_0, window_bounds = array<i64: 1, 4, 256>}, {pipeline_mode = #tpu.pipeline_mode<synchronous>, transform_indices = @transform_1, window_bounds = array<i64: 4, 4>}, {transform_indices = @transform_2, window_bounds = array<i64: 1, 4, 128>}, {transform_indices = @transform_3, window_bounds = array<i64: 1, 4, 128>}]} {
    %c0_i32 = arith.constant 0 : i32
    %0 = arith.cmpi eq, %arg1, %c0_i32 : i32
    %1 = arith.extui %0 : i1 to i32
    %c0_i32_0 = arith.constant 0 : i32
    %2 = arith.cmpi ne, %1, %c0_i32_0 : i32
    scf.if %2 {
      %cst = arith.constant 0.000000e+00 : f32
      %48 = vector.broadcast %cst : f32 to vector<4x128xf32>
      %c0_17 = arith.constant 0 : index
      %c0_18 = arith.constant 0 : index
      %c0_19 = arith.constant 0 : index
      %49 = vector.load %arg4[%c0_17, %c0_18, %c0_19] : memref<1x4x128xf32, #tpu.memory_space<vmem>>, vector<1x4x128xf32>
      %50 = vector.shape_cast %49 : vector<1x4x128xf32> to vector<4x128xf32>
      %51 = vector.shape_cast %48 : vector<4x128xf32> to vector<1x4x128xf32>
      tpu.vector_store %arg4[%c0_17, %c0_18, %c0_19], %51 {strides = array<i32>} : memref<1x4x128xf32, #tpu.memory_space<vmem>>, vector<1x4x128xf32>,
      %cst_20 = arith.constant 0.000000e+00 : f32
      %52 = vector.broadcast %cst_20 : f32 to vector<4x128xf32>
      %c0_21 = arith.constant 0 : index
      %c0_22 = arith.constant 0 : index
      %c0_23 = arith.constant 0 : index
      %53 = vector.load %arg5[%c0_21, %c0_22, %c0_23] : memref<1x4x128xf32, #tpu.memory_space<vmem>>, vector<1x4x128xf32>
      %54 = vector.shape_cast %53 : vector<1x4x128xf32> to vector<4x128xf32>
      %55 = vector.shape_cast %52 : vector<4x128xf32> to vector<1x4x128xf32>
      tpu.vector_store %arg5[%c0_21, %c0_22, %c0_23], %55 {strides = array<i32>} : memref<1x4x128xf32, #tpu.memory_space<vmem>>, vector<1x4x128xf32>,
    } else {
    }
    %c0 = arith.constant 0 : index
    %c0_1 = arith.constant 0 : index
    %3 = vector.load %arg3[%c0, %c0_1] : memref<4x4xf32, #tpu.memory_space<vmem>>, vector<4x4xf32>
    %c0_2 = arith.constant 0 : index
    %c0_3 = arith.constant 0 : index
    %c0_4 = arith.constant 0 : index
    %4 = vector.load %arg2[%c0_2, %c0_3, %c0_4] : memref<1x4x256xf32, #tpu.memory_space<vmem>>, vector<1x4x256xf32>
    %5 = vector.shape_cast %4 : vector<1x4x256xf32> to vector<4x256xf32>
    %6 = vector.extract_strided_slice %3 {offsets = [0, 0], sizes = [4, 1], strides = [1, 1]} : vector<4x4xf32> to vector<4x1xf32>
    %7 = vector.extract_strided_slice %5 {offsets = [0, 0], sizes = [1, 256], strides = [1, 1]} : vector<4x256xf32> to vector<1x256xf32>
    %8 = vector.broadcast %6 : vector<4x1xf32> to vector<4x256xf32>
    %9 = vector.broadcast %7 : vector<1x256xf32> to vector<4x256xf32>
    %10 = arith.mulf %8, %9 : vector<4x256xf32>
    %11 = vector.extract_strided_slice %3 {offsets = [0, 1], sizes = [4, 1], strides = [1, 1]} : vector<4x4xf32> to vector<4x1xf32>
    %12 = vector.extract_strided_slice %5 {offsets = [1, 0], sizes = [1, 256], strides = [1, 1]} : vector<4x256xf32> to vector<1x256xf32>
    %13 = vector.broadcast %11 : vector<4x1xf32> to vector<4x256xf32>
    %14 = vector.broadcast %12 : vector<1x256xf32> to vector<4x256xf32>
    %15 = arith.mulf %13, %14 : vector<4x256xf32>
    %16 = arith.addf %10, %15 : vector<4x256xf32>
    %17 = vector.extract_strided_slice %3 {offsets = [0, 2], sizes = [4, 1], strides = [1, 1]} : vector<4x4xf32> to vector<4x1xf32>
    %18 = vector.extract_strided_slice %5 {offsets = [2, 0], sizes = [1, 256], strides = [1, 1]} : vector<4x256xf32> to vector<1x256xf32>
    %19 = vector.broadcast %17 : vector<4x1xf32> to vector<4x256xf32>
    %20 = vector.broadcast %18 : vector<1x256xf32> to vector<4x256xf32>
    %21 = arith.mulf %19, %20 : vector<4x256xf32>
    %22 = arith.addf %16, %21 : vector<4x256xf32>
    %23 = vector.extract_strided_slice %3 {offsets = [0, 3], sizes = [4, 1], strides = [1, 1]} : vector<4x4xf32> to vector<4x1xf32>
    %24 = vector.extract_strided_slice %5 {offsets = [3, 0], sizes = [1, 256], strides = [1, 1]} : vector<4x256xf32> to vector<1x256xf32>
    %25 = vector.broadcast %23 : vector<4x1xf32> to vector<4x256xf32>
    %26 = vector.broadcast %24 : vector<1x256xf32> to vector<4x256xf32>
    %27 = arith.mulf %25, %26 : vector<4x256xf32>
    %28 = arith.addf %22, %27 : vector<4x256xf32>
    %c0_5 = arith.constant 0 : index
    %c0_6 = arith.constant 0 : index
    %c0_7 = arith.constant 0 : index
    %29 = vector.load %arg4[%c0_5, %c0_6, %c0_7] : memref<1x4x128xf32, #tpu.memory_space<vmem>>, vector<1x4x128xf32>
    %30 = vector.shape_cast %29 : vector<1x4x128xf32> to vector<4x128xf32>
    %31 = vector.extract_strided_slice %28 {offsets = [0, 0], sizes = [4, 128], strides = [1, 1]} : vector<4x256xf32> to vector<4x128xf32>
    %32 = vector.extract_strided_slice %28 {offsets = [0, 128], sizes = [4, 128], strides = [1, 1]} : vector<4x256xf32> to vector<4x128xf32>
    %33 = arith.addf %31, %32 : vector<4x128xf32>
    %34 = arith.addf %30, %33 : vector<4x128xf32>
    %c0_8 = arith.constant 0 : index
    %c0_9 = arith.constant 0 : index
    %c0_10 = arith.constant 0 : index
    %35 = vector.load %arg4[%c0_8, %c0_9, %c0_10] : memref<1x4x128xf32, #tpu.memory_space<vmem>>, vector<1x4x128xf32>
    %36 = vector.shape_cast %35 : vector<1x4x128xf32> to vector<4x128xf32>
    %37 = vector.shape_cast %34 : vector<4x128xf32> to vector<1x4x128xf32>
    tpu.vector_store %arg4[%c0_8, %c0_9, %c0_10], %37 {strides = array<i32>} : memref<1x4x128xf32, #tpu.memory_space<vmem>>, vector<1x4x128xf32>,
    %c0_11 = arith.constant 0 : index
    %c0_12 = arith.constant 0 : index
    %c0_13 = arith.constant 0 : index
    %38 = vector.load %arg5[%c0_11, %c0_12, %c0_13] : memref<1x4x128xf32, #tpu.memory_space<vmem>>, vector<1x4x128xf32>
    %39 = vector.shape_cast %38 : vector<1x4x128xf32> to vector<4x128xf32>
    %40 = arith.mulf %28, %28 : vector<4x256xf32>
    %41 = vector.extract_strided_slice %40 {offsets = [0, 0], sizes = [4, 128], strides = [1, 1]} : vector<4x256xf32> to vector<4x128xf32>
    %42 = vector.extract_strided_slice %40 {offsets = [0, 128], sizes = [4, 128], strides = [1, 1]} : vector<4x256xf32> to vector<4x128xf32>
    %43 = arith.addf %41, %42 : vector<4x128xf32>
    %44 = arith.addf %39, %43 : vector<4x128xf32>
    %c0_14 = arith.constant 0 : index
    %c0_15 = arith.constant 0 : index
    %c0_16 = arith.constant 0 : index
    %45 = vector.load %arg5[%c0_14, %c0_15, %c0_16] : memref<1x4x128xf32, #tpu.memory_space<vmem>>, vector<1x4x128xf32>
    %46 = vector.shape_cast %45 : vector<1x4x128xf32> to vector<4x128xf32>
    %47 = vector.shape_cast %44 : vector<4x128xf32> to vector<1x4x128xf32>
    tpu.vector_store %arg5[%c0_14, %c0_15, %c0_16], %47 {strides = array<i32>} : memref<1x4x128xf32, #tpu.memory_space<vmem>>, vector<1x4x128xf32>,
    return
  }
  func.func @transform_0(%arg0: i32, %arg1: i32) -> (i32, i32, i32) {
    %c0_i32 = arith.constant 0 : i32
    %c0_i32_0 = arith.constant 0 : i32
    return %arg0, %c0_i32, %arg1 : i32, i32, i32
  }
  func.func @transform_1(%arg0: i32, %arg1: i32) -> (i32, i32) {
    %c0_i32 = arith.constant 0 : i32
    %c0_i32_0 = arith.constant 0 : i32
    %c0_i32_1 = arith.constant 0 : i32
    return %c0_i32, %c0_i32_0 : i32, i32
  }
  func.func @transform_2(%arg0: i32, %arg1: i32) -> (i32, i32, i32) {
    %c0_i32 = arith.constant 0 : i32
    %c0_i32_0 = arith.constant 0 : i32
    %c0_i32_1 = arith.constant 0 : i32
    return %arg0, %c0_i32, %c0_i32_0 : i32, i32, i32
  }
  func.func @transform_3(%arg0: i32, %arg1: i32) -> (i32, i32, i32) {
    %c0_i32 = arith.constant 0 : i32
    %c0_i32_0 = arith.constant 0 : i32
    %c0_i32_1 = arith.constant 0 : i32
    return %arg0, %c0_i32, %c0_i32_0 : i32, i32, i32
  }
}

module attributes {stable_mosaic.version = 11 : i64} {
  func.func @_apply_kernel(%arg0: i32, %arg1: i32, %arg2: memref<1x4x256xf32, #tpu.memory_space<vmem>>, %arg3: memref<4x4xf32, #tpu.memory_space<vmem>>, %arg4: memref<4x1xf32, #tpu.memory_space<vmem>>, %arg5: memref<4x1xf32, #tpu.memory_space<vmem>>, %arg6: memref<1x4x256xf32, #tpu.memory_space<vmem>>) attributes {dimension_semantics = [#tpu.dimension_semantics<parallel>, #tpu.dimension_semantics<parallel>], iteration_bounds = array<i64: 2, 1>, scalar_prefetch = 0 : i64, scratch_operands = 0 : i64, tpu.core_type = #tpu.core_type<tc>, window_params = [{transform_indices = @transform_0, window_bounds = array<i64: 1, 4, 256>}, {pipeline_mode = #tpu.pipeline_mode<synchronous>, transform_indices = @transform_1, window_bounds = array<i64: 4, 4>}, {pipeline_mode = #tpu.pipeline_mode<synchronous>, transform_indices = @transform_2, window_bounds = array<i64: 4, 1>}, {pipeline_mode = #tpu.pipeline_mode<synchronous>, transform_indices = @transform_3, window_bounds = array<i64: 4, 1>}, {transform_indices = @transform_4, window_bounds = array<i64: 1, 4, 256>}]} {
    %c0 = arith.constant 0 : index
    %c0_0 = arith.constant 0 : index
    %0 = vector.load %arg3[%c0, %c0_0] : memref<4x4xf32, #tpu.memory_space<vmem>>, vector<4x4xf32>
    %c0_1 = arith.constant 0 : index
    %c0_2 = arith.constant 0 : index
    %c0_3 = arith.constant 0 : index
    %1 = vector.load %arg2[%c0_1, %c0_2, %c0_3] : memref<1x4x256xf32, #tpu.memory_space<vmem>>, vector<1x4x256xf32>
    %2 = vector.shape_cast %1 : vector<1x4x256xf32> to vector<4x256xf32>
    %3 = vector.extract_strided_slice %0 {offsets = [0, 0], sizes = [4, 1], strides = [1, 1]} : vector<4x4xf32> to vector<4x1xf32>
    %4 = vector.extract_strided_slice %2 {offsets = [0, 0], sizes = [1, 256], strides = [1, 1]} : vector<4x256xf32> to vector<1x256xf32>
    %5 = vector.broadcast %3 : vector<4x1xf32> to vector<4x256xf32>
    %6 = vector.broadcast %4 : vector<1x256xf32> to vector<4x256xf32>
    %7 = arith.mulf %5, %6 : vector<4x256xf32>
    %8 = vector.extract_strided_slice %0 {offsets = [0, 1], sizes = [4, 1], strides = [1, 1]} : vector<4x4xf32> to vector<4x1xf32>
    %9 = vector.extract_strided_slice %2 {offsets = [1, 0], sizes = [1, 256], strides = [1, 1]} : vector<4x256xf32> to vector<1x256xf32>
    %10 = vector.broadcast %8 : vector<4x1xf32> to vector<4x256xf32>
    %11 = vector.broadcast %9 : vector<1x256xf32> to vector<4x256xf32>
    %12 = arith.mulf %10, %11 : vector<4x256xf32>
    %13 = arith.addf %7, %12 : vector<4x256xf32>
    %14 = vector.extract_strided_slice %0 {offsets = [0, 2], sizes = [4, 1], strides = [1, 1]} : vector<4x4xf32> to vector<4x1xf32>
    %15 = vector.extract_strided_slice %2 {offsets = [2, 0], sizes = [1, 256], strides = [1, 1]} : vector<4x256xf32> to vector<1x256xf32>
    %16 = vector.broadcast %14 : vector<4x1xf32> to vector<4x256xf32>
    %17 = vector.broadcast %15 : vector<1x256xf32> to vector<4x256xf32>
    %18 = arith.mulf %16, %17 : vector<4x256xf32>
    %19 = arith.addf %13, %18 : vector<4x256xf32>
    %20 = vector.extract_strided_slice %0 {offsets = [0, 3], sizes = [4, 1], strides = [1, 1]} : vector<4x4xf32> to vector<4x1xf32>
    %21 = vector.extract_strided_slice %2 {offsets = [3, 0], sizes = [1, 256], strides = [1, 1]} : vector<4x256xf32> to vector<1x256xf32>
    %22 = vector.broadcast %20 : vector<4x1xf32> to vector<4x256xf32>
    %23 = vector.broadcast %21 : vector<1x256xf32> to vector<4x256xf32>
    %24 = arith.mulf %22, %23 : vector<4x256xf32>
    %25 = arith.addf %19, %24 : vector<4x256xf32>
    %c0_4 = arith.constant 0 : index
    %c0_5 = arith.constant 0 : index
    %26 = vector.load %arg4[%c0_4, %c0_5] : memref<4x1xf32, #tpu.memory_space<vmem>>, vector<4x1xf32>
    %27 = vector.broadcast %26 : vector<4x1xf32> to vector<4x256xf32>
    %28 = arith.mulf %25, %27 : vector<4x256xf32>
    %c0_6 = arith.constant 0 : index
    %c0_7 = arith.constant 0 : index
    %29 = vector.load %arg5[%c0_6, %c0_7] : memref<4x1xf32, #tpu.memory_space<vmem>>, vector<4x1xf32>
    %30 = vector.broadcast %29 : vector<4x1xf32> to vector<4x256xf32>
    %31 = arith.addf %28, %30 : vector<4x256xf32>
    %cst = arith.constant 0.000000e+00 : f32
    %32 = vector.broadcast %cst : f32 to vector<4x256xf32>
    %33 = arith.maximumf %31, %32 : vector<4x256xf32>
    %c0_8 = arith.constant 0 : index
    %c0_9 = arith.constant 0 : index
    %c0_10 = arith.constant 0 : index
    %34 = vector.load %arg6[%c0_8, %c0_9, %c0_10] : memref<1x4x256xf32, #tpu.memory_space<vmem>>, vector<1x4x256xf32>
    %35 = vector.shape_cast %34 : vector<1x4x256xf32> to vector<4x256xf32>
    %36 = vector.shape_cast %33 : vector<4x256xf32> to vector<1x4x256xf32>
    tpu.vector_store %arg6[%c0_8, %c0_9, %c0_10], %36 {strides = array<i32>} : memref<1x4x256xf32, #tpu.memory_space<vmem>>, vector<1x4x256xf32>,
    return
  }
  func.func @transform_0(%arg0: i32, %arg1: i32) -> (i32, i32, i32) {
    %c0_i32 = arith.constant 0 : i32
    %c0_i32_0 = arith.constant 0 : i32
    return %arg0, %c0_i32, %arg1 : i32, i32, i32
  }
  func.func @transform_1(%arg0: i32, %arg1: i32) -> (i32, i32) {
    %c0_i32 = arith.constant 0 : i32
    %c0_i32_0 = arith.constant 0 : i32
    %c0_i32_1 = arith.constant 0 : i32
    return %c0_i32, %c0_i32_0 : i32, i32
  }
  func.func @transform_2(%arg0: i32, %arg1: i32) -> (i32, i32) {
    %c0_i32 = arith.constant 0 : i32
    %c0_i32_0 = arith.constant 0 : i32
    %c0_i32_1 = arith.constant 0 : i32
    return %c0_i32, %c0_i32_0 : i32, i32
  }
  func.func @transform_3(%arg0: i32, %arg1: i32) -> (i32, i32) {
    %c0_i32 = arith.constant 0 : i32
    %c0_i32_0 = arith.constant 0 : i32
    %c0_i32_1 = arith.constant 0 : i32
    return %c0_i32, %c0_i32_0 : i32, i32
  }
  func.func @transform_4(%arg0: i32, %arg1: i32) -> (i32, i32, i32) {
    %c0_i32 = arith.constant 0 : i32
    %c0_i32_0 = arith.constant 0 : i32
    return %arg0, %c0_i32, %arg1 : i32, i32, i32
  }
}

</mosaic_0001>

<bundles_post_ra>
// kernel: bottleneck_forward.2
= control target key start
LH: loop header
LB: loop body
LE: loop exit
PB: predicated region body
PF: predicated region fallthrough
CT: control target
= control target key end

     0   :  { %s475_s12 = smov 0   ;;  %s477_s13 = smov 0   ;;  %s524_s0 = inlined_call_operand.vmem [shape: f32[2,4,256], index: 0, kind: input, shape index: {}]   ;;  %s525_s1 = inlined_call_operand.vmem [shape: f32[4,4], index: 1, kind: input, shape index: {}]   ;;  %s526_s2 = inlined_call_operand.vmem [shape: f32[2,4,128], index: 2, kind: output, shape index: {0}]   ;;  %s527_s3 = inlined_call_operand.vmem [shape: f32[2,4,128], index: 3, kind: output, shape index: {1}]  }
   0x1   :  { %s479_s14 = smov 0  }
   0x2 LB: > { %s26_s15 = sadd.s32 1, %s444_s13  ;;  %p384_p0 = scmp.ge.s32.totalorder %s448_s14, 1  ;;  %s448_s14 = sphi %s479_s14, %s14_s14   ;;  %s444_s13 = sphi %s477_s13, %s529_s13   ;;  %s440_s12 = sphi %s475_s12, %s528_s12  }
   0x3   : > { %p28_p1 = scmp.ge.s32.totalorder %s26_s15, 2  ;;  %p159_p2 = scmp.lt.s32.totalorder %s448_s14, 3 }
   0x5   : > { %s531_s15 = smov (%p28_p1, %s26_s15), 0  ;;  %p160_p3 = pnand %p384_p0, %p159_p2 }
   0x6   : > { %p191_p4 = scmp.lt.s32.totalorder (!%p160_p3), %s440_s12, 1 }
   0x7   : > { %163 = sbr.rel (%p160_p3) target bundleno = 153 (0x99), region = 28 }
   0xc   : > { %v214_v0 = vld [vmem:[%s525_s1] sm:$0xf]  ;;  %v450_v1 = vmov 0   ;;  %v451_v2 = vmov 2   ;;  %v452_v3 = vmov 1   ;;  %v453_v4 = vmov 3  }
   0xd   : > { %421 = vset.pattern.permute.xlu0 %v450_v1  ;;  %423 = vset.pattern.permute.xlu1 %v451_v2  ;;  %s533_s12 = smov (!%p191_p4, %s440_s12), 1  ;;  %v454_v5 = vmov 0.0  }
   0xe   : > { %218 = vperm.xlu0 %421, %v214_v0   ;;  %245 = vperm.xlu1 %423, %v214_v0   ;;  %s387_s18 = sshll.u32 %s533_s12, 2  ;;  %s391_s25 = sshll.u32 %s533_s12, 3 }
   0xf   : > { %s499_s21 = scalar_lea.vmem %s526_s2, %s387_s18  ;;  %s504_s24 = scalar_lea.vmem %s527_s3, %s387_s18 }
  0x10   : > { %212 = vst [vmem:[%s499_s21] sm:$0xf] %v454_v5  ;;  %s198_s28 = scalar_lea.vmem %s524_s0, %s391_s25 }
  0x11   : > { %213 = vst [vmem:[%s504_s24] sm:$0xf] %v454_v5  ;;  %v215_v6 = vld [vmem:[%s198_s28] sm:$0xff] }
  0x12   : > { %v222_v9 = vperm.slane %v215_v6, 0  ;;  %v223_v10 = vperm.slane %v215_v6, 4  ;;  %v234_v11 = vperm.slane %v215_v6, 1  ;;  %v235_v12 = vperm.slane %v215_v6, 5 }
  0x13   : > { %v248_v13 = vperm.slane %v215_v6, 2  ;;  %v249_v14 = vperm.slane %v215_v6, 6  ;;  %v262_v15 = vperm.slane %v215_v6, 3  ;;  %v263_v16 = vperm.slane %v215_v6, 7 }
  0x14   : > { %v226_v17 = vperm.slane %v222_v9, 0  ;;  %v227_v18 = vperm.slane %v223_v10, 0  ;;  %v238_v19 = vperm.slane %v234_v11, 1  ;;  %v239_v20 = vperm.slane %v235_v12, 1 }
  0x15   : > { %v252_v21 = vperm.slane %v248_v13, 2  ;;  %v253_v22 = vperm.slane %v249_v14, 2  ;;  %v266_v23 = vperm.slane %v262_v15, 3  ;;  %v267_v24 = vperm.slane %v263_v16, 3 }
  0x16   : > { %422 = vset.pattern.permute.xlu0 %v452_v3  ;;  %424 = vset.pattern.permute.xlu1 %v453_v4 }
  0x17   : > { %231 = vperm.xlu0 %422, %v214_v0   ;;  %259 = vperm.xlu1 %424, %v214_v0   ;;  %v272_v41 = vld [vmem:[%s499_s21] sm:$0xf] }
  0x18   : > { %v276_v45 = vld [vmem:[%s504_s24] sm:$0xf] }
  0x1f   : > { %425 = vset.pattern.permute.xlu0 %v453_v4 }
  0x80   : > { %v219_v7 = vpop.permute.xlu0 %218  ;;  %v246_v8 = vpop.permute.xlu1 %245 }
  0x81   : > { %v228_v27 = vmul.f32 %v226_v17, %v219_v7  ;;  %v229_v28 = vmul.f32 %v227_v18, %v219_v7  ;;  %v254_v31 = vmul.f32 %v252_v21, %v246_v8  ;;  %v255_v32 = vmul.f32 %v253_v22, %v246_v8 }
  0x89   : > { %v232_v25 = vpop.permute.xlu0 %231  ;;  %v260_v26 = vpop.permute.xlu1 %259 }
  0x8a   : > { %v240_v29 = vmul.f32 %v238_v19, %v232_v25  ;;  %v241_v30 = vmul.f32 %v239_v20, %v232_v25  ;;  %v268_v35 = vmul.f32 %v266_v23, %v260_v26  ;;  %v269_v36 = vmul.f32 %v267_v24, %v260_v26 }
  0x8c   : > { %v242_v33 = vadd.f32 %v240_v29, %v228_v27  ;;  %v243_v34 = vadd.f32 %v241_v30, %v229_v28 }
  0x8e   : > { %v256_v37 = vadd.f32 %v254_v31, %v242_v33  ;;  %v257_v38 = vadd.f32 %v255_v32, %v243_v34 }
  0x90   : > { %v270_v39 = vadd.f32 %v268_v35, %v256_v37  ;;  %v271_v40 = vadd.f32 %v269_v36, %v257_v38 }
  0x92   : > { %v273_v42 = vadd.f32 %v271_v40, %v270_v39  ;;  %v277_v43 = vmul.f32 %v270_v39, %v270_v39  ;;  %v278_v44 = vmul.f32 %v271_v40, %v271_v40 }
  0x94   : > { %v274_v46 = vadd.f32 %v273_v42, %v272_v41  ;;  %v279_v47 = vadd.f32 %v278_v44, %v277_v43 }
  0x96   : > { %275 = vst [vmem:[%s499_s21] sm:$0xf] %v274_v46  ;;  %v280_v48 = vadd.f32 %v279_v47, %v276_v45 }
  0x98   : > { %281 = vst [vmem:[%s504_s24] sm:$0xf] %v280_v48 }
  0x99 PF: > { %s14_s14 = sadd.s32 1, %s448_s14   ;;  %s528_s12 = smov %s444_s13 }
  0x9a   : > { %p11_p5 = scmp.ge.s32.totalorder %s14_s14, 4   ;;  %s529_s13 = smov %s531_s15 }
  0x9c   :  { %13 = sbr.rel (!%p11_p5) target bundleno = 2 (0x2), region = 74 }

// kernel: bottleneck_forward.3
= control target key start
LH: loop header
LB: loop body
LE: loop exit
PB: predicated region body
PF: predicated region fallthrough
CT: control target
= control target key end

     0   :  { %s507_s15 = smov 0   ;;  %s509_s16 = smov 0   ;;  %s560_s0 = inlined_call_operand.vmem [shape: f32[2,4,256], index: 0, kind: input, shape index: {}]   ;;  %s561_s1 = inlined_call_operand.vmem [shape: f32[4,4], index: 1, kind: input, shape index: {}]   ;;  %s562_s2 = inlined_call_operand.vmem [shape: f32[4,1], index: 2, kind: input, shape index: {}]   ;;  %s563_s3 = inlined_call_operand.vmem [shape: f32[4,1], index: 3, kind: input, shape index: {}]   ;;  %s564_s4 = inlined_call_operand.vmem [shape: f32[2,4,256], index: 4, kind: output, shape index: {}]  }
   0x1   :  { %s511_s17 = smov 0  }
   0x2 LB: > { %s26_s18 = sadd.s32 1, %s472_s16  ;;  %p411_p0 = scmp.ge.s32.totalorder %s476_s17, 1  ;;  %s476_s17 = sphi %s511_s17, %s14_s17   ;;  %s472_s16 = sphi %s509_s16, %s566_s16   ;;  %s468_s15 = sphi %s507_s15, %s565_s15  }
   0x3   : > { %p28_p1 = scmp.ge.s32.totalorder %s26_s18, 2  ;;  %p183_p2 = scmp.lt.s32.totalorder %s476_s17, 3 }
   0x5   : > { %s568_s18 = smov (%p28_p1, %s26_s18), 0  ;;  %p184_p3 = pnand %p411_p0, %p183_p2 }
   0x6   : > { %p218_p4 = scmp.lt.s32.totalorder (!%p184_p3), %s468_s15, 1 }
   0x7   : > { %187 = sbr.rel (%p184_p3) target bundleno = 156 (0x9c), region = 36 }
   0xc   : > { %v237_v0 = vld [vmem:[%s561_s1] sm:$0xf]  ;;  %v478_v1 = vmov 0   ;;  %v479_v2 = vmov 2   ;;  %v480_v5 = vmov 1   ;;  %v481_v6 = vmov 3  }
   0xd   : > { %448 = vset.pattern.permute.xlu0 %v478_v1  ;;  %450 = vset.pattern.permute.xlu1 %v479_v2  ;;  %v295_v3 = vld [vmem:[%s562_s2] sm:$0xf]  ;;  %s570_s15 = smov (!%p218_p4, %s468_s15), 1  ;;  %vm316_vm0 = vcmask 1043456  }
   0xe   : > { %241 = vperm.xlu0 %448, %v237_v0   ;;  %268 = vperm.xlu1 %450, %v237_v0   ;;  %v303_v4 = vld [vmem:[%s563_s3] sm:$0xf]  ;;  %s418_s25 = sshll.u32 %s570_s15, 3 }
   0xf   : > { %452 = vset.pattern.permute.xlu2 %v478_v1  ;;  %s225_s28 = scalar_lea.vmem %s560_s0, %s418_s25  ;;  %s235_s5 = scalar_lea.vmem %s564_s4, %s418_s25 }
  0x10   : > { %298 = vperm.xlu2 %452, %v295_v3   ;;  %v238_v7 = vld [vmem:[%s225_s28] sm:$0xff] }
  0x11   : > { %v245_v10 = vperm.slane %v238_v7, 0  ;;  %v246_v11 = vperm.slane %v238_v7, 4  ;;  %v257_v12 = vperm.slane %v238_v7, 1  ;;  %v258_v13 = vperm.slane %v238_v7, 5 }
  0x12   : > { %v271_v14 = vperm.slane %v238_v7, 2  ;;  %v272_v15 = vperm.slane %v238_v7, 6  ;;  %v285_v16 = vperm.slane %v238_v7, 3  ;;  %v286_v17 = vperm.slane %v238_v7, 7 }
  0x13   : > { %v249_v18 = vperm.slane %v245_v10, 0  ;;  %v250_v19 = vperm.slane %v246_v11, 0  ;;  %v261_v20 = vperm.slane %v257_v12, 1  ;;  %v262_v21 = vperm.slane %v258_v13, 1 }
  0x14   : > { %v275_v22 = vperm.slane %v271_v14, 2  ;;  %v276_v23 = vperm.slane %v272_v15, 2  ;;  %v289_v25 = vperm.slane %v285_v16, 3  ;;  %v290_v26 = vperm.slane %v286_v17, 3 }
  0x16   : > { %449 = vset.pattern.permute.xlu0 %v480_v5  ;;  %451 = vset.pattern.permute.xlu1 %v481_v6 }
  0x17   : > { %254 = vperm.xlu0 %449, %v237_v0   ;;  %282 = vperm.xlu1 %451, %v237_v0  }
  0x18   : > { %306 = vperm.xlu2 %452, %v303_v4  }
  0x1f   : > { %453 = vset.pattern.permute.xlu0 %v478_v1 }
  0x6a   : > { %v299_v24 = vpop.permute.xlu2 %298 }
  0x72   : > { %v307_v45 = vpop.permute.xlu2 %306 }
  0x80   : > { %v242_v8 = vpop.permute.xlu0 %241  ;;  %v269_v9 = vpop.permute.xlu1 %268 }
  0x81   : > { %v251_v29 = vmul.f32 %v249_v18, %v242_v8  ;;  %v252_v30 = vmul.f32 %v250_v19, %v242_v8  ;;  %v277_v33 = vmul.f32 %v275_v22, %v269_v9  ;;  %v278_v34 = vmul.f32 %v276_v23, %v269_v9 }
  0x89   : > { %v255_v27 = vpop.permute.xlu0 %254  ;;  %v283_v28 = vpop.permute.xlu1 %282 }
  0x8a   : > { %v263_v31 = vmul.f32 %v261_v20, %v255_v27  ;;  %v264_v32 = vmul.f32 %v262_v21, %v255_v27  ;;  %v291_v37 = vmul.f32 %v289_v25, %v283_v28  ;;  %v292_v38 = vmul.f32 %v290_v26, %v283_v28 }
  0x8c   : > { %v265_v35 = vadd.f32 %v263_v31, %v251_v29  ;;  %v266_v36 = vadd.f32 %v264_v32, %v252_v30 }
  0x8e   : > { %v279_v39 = vadd.f32 %v277_v33, %v265_v35  ;;  %v280_v40 = vadd.f32 %v278_v34, %v266_v36 }
  0x90   : > { %v293_v41 = vadd.f32 %v291_v37, %v279_v39  ;;  %v294_v42 = vadd.f32 %v292_v38, %v280_v40 }
  0x92   : > { %v301_v43 = vmul.f32 %v299_v24, %v293_v41  ;;  %v302_v44 = vmul.f32 %v299_v24, %v294_v42 }
  0x94   : > { %v309_v46 = vadd.f32 %v307_v45, %v301_v43  ;;  %v310_v47 = vadd.f32 %v307_v45, %v302_v44 }
  0x96   : > { %v312_v48 = vmax.f32 %v310_v47, 0.0  ;;  %v311_v49 = vmax.f32 %v309_v46, 0.0 }
  0x98   : > { %v315_v50 = vrot.slane %v312_v48, 4 }
  0x9a   : > { %v317_v51 = vsel %vm316_vm0, %v311_v49, %v315_v50 }
  0x9b   : > { %319 = vst [vmem:[%s235_s5] sm:$0xff] %v317_v51 }
  0x9c PF: > { %s14_s17 = sadd.s32 1, %s476_s17   ;;  %s565_s15 = smov %s472_s16 }
  0x9d   : > { %p11_p5 = scmp.ge.s32.totalorder %s14_s17, 4   ;;  %s566_s16 = smov %s568_s18 }
  0x9f   :  { %13 = sbr.rel (!%p11_p5) target bundleno = 2 (0x2), region = 66 }

</bundles_post_ra>
